<compile_context>
chip_gen: v5e
topology: v5e:2x2
jax: 0.10.0
libtpu: 0.0.40
codegen_flags: <defaults>
</compile_context>

<pallas_src>
import functools

import jax
import jax.numpy as jnp
from jax.experimental import pallas as pl
from jax.experimental.pallas import tpu as pltpu


def _int_pow(base, n):
    """base**n for integer n >= 1 via exponentiation-by-squaring (VPU muls only)."""
    result = None
    cur = base
    while n:
        if n & 1:
            result = cur if result is None else result * cur
        n >>= 1
        if n:
            cur = cur * cur
    return result


def _focal_loss_kernel(logits_ref, targets_ref, out_ref, *,
                       gamma, block_rows, n_valid, mask_rows, hard_targets):
    x = logits_ref[...].astype(jnp.float32)
    t = targets_ref[...].astype(jnp.float32)
    rows, c = x.shape

    # Numerically-stable BCE with logits (torch binary_cross_entropy_with_logits,
    # reduction='none', weight=None):
    #   bce = max(x, 0) - x*t + log1p(exp(-|x|))
    e = jnp.exp(-jnp.abs(x))
    bce = jnp.maximum(x, 0.0) - x * t + jnp.log1p(e)

    if hard_targets:
        # For hard {0,1} targets, p_t == exp(-bce) can be formed from `e` with
        # selects + one (approx) reciprocal instead of a second full exp:
        #   p_t = sigmoid(x)      if t == 1
        #   p_t = 1 - sigmoid(x)  if t == 0
        num = jnp.where(t > 0.5,
                        jnp.where(x < 0.0, e, 1.0),
                        jnp.where(x >= 0.0, e, 1.0))
        p_t = num * pl.reciprocal(1.0 + e, approx=True)
    else:
        # Exact module semantics (also valid for soft targets).
        p_t = jnp.exp(-bce)

    one_minus_pt = 1.0 - p_t

    g = float(gamma)
    ig = int(g)
    if g == 0.0:
        mod = jnp.ones_like(one_minus_pt)
    elif g == float(ig) and 1 <= ig <= 16:
        mod = _int_pow(one_minus_pt, ig)      # unrolled VPU multiplies
    else:
        mod = jnp.power(one_minus_pt, g)      # general (EUP exp/log) fallback

    loss = mod * bce

    def _store(l):
        # Per-block partial sum collapsed onto one (8, C) slab: pure VPU vreg adds,
        # no serial accumulator, no per-step cross-lane reduce.
        out_ref[...] = l.reshape(rows // 8, 8, c).sum(axis=0)

    if mask_rows:
        # Boundary-block contents past N are unspecified (no padding pre-pass);
        # only the last grid block pays for the row mask.
        i = pl.program_id(0)
        is_last = i == pl.num_programs(0) - 1

        @pl.when(is_last)
        def _():
            row_idx = i * block_rows + jax.lax.broadcasted_iota(
                jnp.int32, (rows, c), 0)
            _store(jnp.where(row_idx < n_valid, loss, 0.0))

        @pl.when(jnp.logical_not(is_last))
        def _():
            _store(loss)
    else:
        _store(loss)


def focal_loss(logits, targets, gamma=2.0, reduction="mean", hard_targets=False):
    """Pallas TPU focal loss. logits/targets: (N, C) float arrays. Returns a scalar."""
    assert logits.shape == targets.shape
    assert logits.ndim == 2
    N, C = logits.shape

    itemsize = jnp.dtype(logits.dtype).itemsize
    C_pad = ((C + 127) // 128) * 128          # lane-padded width (VMEM budgeting only)

    # Adaptive row tile: one input tile ~2 MiB regardless of C.
    TILE_TARGET = 2 * 1024 * 1024
    br = TILE_TARGET // (C_pad * itemsize)
    br = max(16, min(1024, (br // 16) * 16))  # multiple of 16 (bf16-safe sublanes)
    n_ceil = ((N + 15) // 16) * 16
    br = min(br, n_ceil)
    # Megacore: ensure >= 2 grid blocks whenever N permits (v7x has 2 TCs).
    if n_ceil >= 32 and pl.cdiv(N, br) < 2:
        br = (((n_ceil // 2) + 15) // 16) * 16

    num_blocks = pl.cdiv(N, br)
    mask_rows = (N % br) != 0

    kernel = functools.partial(
        _focal_loss_kernel,
        gamma=float(gamma),
        block_rows=br,
        n_valid=N,
        mask_rows=mask_rows,
        hard_targets=bool(hard_targets),
    )

    # VMEM budget: 2 inputs x 2 pipeline buffers x tile (+ small output buffers).
    # With the adaptive tile this stays well under every generation's scoped
    # default; only raise the limit for extreme C, capped < v7x's 64 MiB physical.
    vmem_needed = 2 * 2 * br * C_pad * itemsize + 4 * 8 * C_pad * 4
    vmem_limit = None
    if vmem_needed > 12 * 1024 * 1024:
        vmem_limit = min(int(vmem_needed * 3 // 2), 48 * 1024 * 1024)

    partials = pl.pallas_call(
        kernel,
        out_shape=jax.ShapeDtypeStruct((num_blocks * 8, C), jnp.float32),
        grid_spec=pltpu.PrefetchScalarGridSpec(
            num_scalar_prefetch=0,
            grid=(num_blocks,),
            in_specs=[
                pl.BlockSpec((br, C), lambda i: (i, 0)),
                pl.BlockSpec((br, C), lambda i: (i, 0)),
            ],
            out_specs=pl.BlockSpec((8, C), lambda i: (i, 0)),
        ),
        compiler_params=pltpu.CompilerParams(
            dimension_semantics=("parallel",),   # independent partials; megacore on v7x
            vmem_limit_bytes=vmem_limit,
        ),
    )(logits, targets)

    total = jnp.sum(partials)
    if reduction == "mean":
        return total / jnp.float32(N * C)        # torch .mean() over all N*C elements
    return total                                  # torch falls through to .sum()


def focal_loss_ref(logits, targets, gamma=2.0, reduction="mean"):
    x = logits.astype(jnp.float32)
    t = targets.astype(jnp.float32)
    bce = jnp.maximum(x, 0.0) - x * t + jnp.log1p(jnp.exp(-jnp.abs(x)))
    p_t = jnp.exp(-bce)
    loss = (1.0 - p_t) ** gamma * bce
    return jnp.mean(loss) if reduction == "mean" else jnp.sum(loss)


if __name__ == "__main__":
    key = jax.random.PRNGKey(0)
    k1, k2, k3, k4 = jax.random.split(key, 4)

    # Small multi-label classification problem: batch=16, num_genres=128.
    N, C = 16, 128
    logits = jax.random.normal(k1, (N, C), dtype=jnp.float32) * 2.0
    targets = (jax.random.uniform(k2, (N, C)) < 0.3).astype(jnp.float32)

    out = jax.block_until_ready(focal_loss(logits, targets, gamma=2.0))
    ref = focal_loss_ref(logits, targets, gamma=2.0)
    assert jnp.allclose(out, ref, rtol=1e-5, atol=1e-6), (out, ref)

    # Non-aligned shapes exercise the boundary-row masking path (no padding pre-pass).
    N2, C2 = 50, 100
    logits2 = jax.random.normal(k3, (N2, C2), dtype=jnp.float32) * 2.0
    targets2 = (jax.random.uniform(k4, (N2, C2)) < 0.3).astype(jnp.float32)

    out2 = jax.block_until_ready(focal_loss(logits2, targets2, gamma=2.0))
    ref2 = focal_loss_ref(logits2, targets2, gamma=2.0)
    assert jnp.allclose(out2, ref2, rtol=1e-5, atol=1e-6), (out2, ref2)

    # Hard-target fast path (one fewer full exp per element; approx reciprocal).
    out3 = jax.block_until_ready(
        focal_loss(logits2, targets2, gamma=2.0, hard_targets=True))
    assert jnp.allclose(out3, ref2, rtol=1e-2, atol=1e-3), (out3, ref2)

    # Sum reduction.
    out4 = jax.block_until_ready(focal_loss(logits, targets, gamma=2.0, reduction="sum"))
    ref4 = focal_loss_ref(logits, targets, gamma=2.0, reduction="sum")
    assert jnp.allclose(out4, ref4, rtol=1e-5, atol=1e-4), (out4, ref4)

    print("KERNEL_OK")
</pallas_src>

<mosaic_0001>
module attributes {stable_mosaic.version = 11 : i64} {
  func.func @_focal_loss_kernel(%arg0: i32, %arg1: memref<16x128xf32, #tpu.memory_space<vmem>>, %arg2: memref<16x128xf32, #tpu.memory_space<vmem>>, %arg3: memref<8x128xf32, #tpu.memory_space<vmem>>) attributes {dimension_semantics = [#tpu.dimension_semantics<parallel>], iteration_bounds = array<i64: 1>, scalar_prefetch = 0 : i64, scratch_operands = 0 : i64, tpu.core_type = #tpu.core_type<tc>, window_params = [{transform_indices = @transform_0, window_bounds = array<i64: 16, 128>}, {transform_indices = @transform_1, window_bounds = array<i64: 16, 128>}, {transform_indices = @transform_2, window_bounds = array<i64: 8, 128>}]} {
    %c0 = arith.constant 0 : index
    %c0_0 = arith.constant 0 : index
    %0 = vector.load %arg1[%c0, %c0_0] : memref<16x128xf32, #tpu.memory_space<vmem>>, vector<16x128xf32>
    %c0_1 = arith.constant 0 : index
    %c0_2 = arith.constant 0 : index
    %1 = vector.load %arg2[%c0_1, %c0_2] : memref<16x128xf32, #tpu.memory_space<vmem>>, vector<16x128xf32>
    %2 = math.absf %0 : vector<16x128xf32>
    %cst = arith.constant 0.000000e+00 : f32
    %3 = vector.broadcast %cst : f32 to vector<16x128xf32>
    %4 = arith.subf %3, %2 : vector<16x128xf32>
    %5 = math.exp %4 : vector<16x128xf32>
    %cst_3 = arith.constant 0.000000e+00 : f32
    %6 = vector.broadcast %cst_3 : f32 to vector<16x128xf32>
    %7 = arith.maximumf %0, %6 : vector<16x128xf32>
    %8 = arith.mulf %0, %1 : vector<16x128xf32>
    %9 = arith.subf %7, %8 : vector<16x128xf32>
    %10 = math.log1p %5 : vector<16x128xf32>
    %11 = arith.addf %9, %10 : vector<16x128xf32>
    %cst_4 = arith.constant 0.000000e+00 : f32
    %12 = vector.broadcast %cst_4 : f32 to vector<16x128xf32>
    %13 = arith.subf %12, %11 : vector<16x128xf32>
    %14 = math.exp %13 : vector<16x128xf32>
    %cst_5 = arith.constant 1.000000e+00 : f32
    %15 = vector.broadcast %cst_5 : f32 to vector<16x128xf32>
    %16 = arith.subf %15, %14 : vector<16x128xf32>
    %17 = arith.mulf %16, %16 : vector<16x128xf32>
    %18 = arith.mulf %17, %11 : vector<16x128xf32>
    %19 = vector.shape_cast %18 : vector<16x128xf32> to vector<2x8x128xf32>
    %cst_6 = arith.constant dense<0.000000e+00> : vector<8x128xf32>
    %20 = vector.multi_reduction <add>, %19, %cst_6 [0] : vector<2x8x128xf32> to vector<8x128xf32>
    %c0_7 = arith.constant 0 : index
    %c0_8 = arith.constant 0 : index
    %21 = vector.load %arg3[%c0_7, %c0_8] : memref<8x128xf32, #tpu.memory_space<vmem>>, vector<8x128xf32>
    tpu.vector_store %arg3[%c0_7, %c0_8], %20 {strides = array<i32>} : memref<8x128xf32, #tpu.memory_space<vmem>>, vector<8x128xf32>,
    return
  }
  func.func @transform_0(%arg0: i32) -> (i32, i32) {
    %c0_i32 = arith.constant 0 : i32
    %c0_i32_0 = arith.constant 0 : i32
    return %arg0, %c0_i32 : i32, i32
  }
  func.func @transform_1(%arg0: i32) -> (i32, i32) {
    %c0_i32 = arith.constant 0 : i32
    %c0_i32_0 = arith.constant 0 : i32
    return %arg0, %c0_i32 : i32, i32
  }
  func.func @transform_2(%arg0: i32) -> (i32, i32) {
    %c0_i32 = arith.constant 0 : i32
    %c0_i32_0 = arith.constant 0 : i32
    return %arg0, %c0_i32 : i32, i32
  }
}

</mosaic_0001>

<bundles_post_ra>
// kernel: tpu_custom_call.1
= control target key start
LH: loop header
LB: loop body
LE: loop exit
PB: predicated region body
PF: predicated region fallthrough
CT: control target
= control target key end

     0   :  { %7 = vsyncpa [#allocation3], 0  ;;  %s238_s0 = inlined_call_operand.hbm [shape: f32[16,128], index: 0, kind: input, shape index: {}]   ;;  %s239_s1 = inlined_call_operand.hbm [shape: f32[16,128], index: 1, kind: input, shape index: {}]   ;;  %s240_s2 = inlined_call_operand.hbm [shape: f32[8,128], index: 2, kind: output, shape index: {}]  }
   0x1   :  { %8 = vsyncpa [#allocation6], 0 }
   0x2   :  { %9 = vsyncpa [#allocation4], 0  ;;  %s14_s11 = sshll.u32 %s238_s0, 4  ;;  %s209_s12 = smov [#allocation2]   ;;  %s15_s11 = int_to_ptr.hbm [resolvable:$true] %s14_s11 }
   0x3   :  { %s16_s13 = sshll.u32 %s209_s12, 4  ;;  %s27_s16 = sshll.u32 %s239_s1, 4  ;;  %s17_s13 = int_to_ptr.vmem [resolvable:$true] %s16_s13  ;;  %s28_s16 = int_to_ptr.hbm [resolvable:$true] %s27_s16 }
   0x4   :  { %s210_s17 = smov 128   ;;  %s211_s18 = smov 8  }
   0x5   :  { %22 = dma.hbm_to_vmem [thread:$0]  %s15_s11, 256, %s17_s13, [#allocation3], %s210_s17, %s210_s17, %s211_s18  }
   0x6   :  { %s212_s19 = smov [#allocation5]  }
   0x7   :  { %s29_s20 = sshll.u32 %s212_s19, 4  ;;  %s30_s20 = int_to_ptr.vmem [resolvable:$true] %s29_s20 }
   0x8   :  { %35 = dma.hbm_to_vmem [thread:$0]  %s28_s16, 256, %s30_s20, [#allocation6], %s210_s17, %s210_s17, %s211_s18  }
   0x9   :  { %203 = dma.done.wait [#allocation3], 256  }
   0xa   :  { %204 = vsyncadd [#allocation3], 4294967040 }
   0xb   :  { %205 = dma.done.wait [#allocation6], 256  }
   0xc   :  { %206 = vsyncadd [#allocation6], 4294967040  ;;  %v44_v0 = vld [vmem:[#allocation2] sm:$0xff]  ;;  %v45_v1 = vld [vmem:[#allocation2 + $0x8] sm:$0xff]  ;;  %s213_s0 = smov [#allocation7]   ;;  %s103_s23 = sshll.u32 %s240_s2, 4  ;;  %s104_s23 = int_to_ptr.hbm [resolvable:$true] %s103_s23 }
   0xd   :  { %v48_v2 = vand.u32 2147483647, %v44_v0  ;;  %v49_v3 = vand.u32 2147483647, %v45_v1  ;;  %v46_v12 = vld [vmem:[#allocation5] sm:$0xff]  ;;  %v47_v15 = vld [vmem:[#allocation5 + $0x8] sm:$0xff] }
   0xe   :  { %v56_v17 = vmax.f32 %v44_v0, 0.0  ;;  %v58_v18 = vmul.f32 %v46_v12, %v44_v0  ;;  %v57_v21 = vmax.f32 %v45_v1, 0.0  ;;  %v59_v22 = vmul.f32 %v47_v15, %v45_v1  ;;  %s101_s1 = sshll.u32 %s213_s0, 4  ;;  %s102_s1 = int_to_ptr.vmem [resolvable:$true] %s101_s1 }
   0xf   :  { %v50_v4 = vsub.f32 0.0, %v48_v2  ;;  %v51_v5 = vsub.f32 0.0, %v49_v3 }
  0x10   :  { %v60_v26 = vsub.f32 %v56_v17, %v58_v18  ;;  %v61_v29 = vsub.f32 %v57_v21, %v59_v22 }
  0x11   :  { %v52_v6 = vmul.f32 1.442695, %v50_v4  ;;  %v54_v7 = vmul.f32 1.442695, %v51_v5 }
  0x13   :  { %119 = vpow2.f32 %v52_v6 }
  0x14   :  { %121 = vpow2.f32 %v54_v7 }
  0x19   :  { %v120_v8 = vpop.eup %119 }
  0x1a   :  { %v122_v9 = vpop.eup %121  ;;  %v62_v10 = vadd.f32 1.0, %v120_v8  ;;  %v65_v11 = vmul.f32 -0.5, %v120_v8  ;;  %v68_v19 = vand.u32 2147483647, %v120_v8 }
  0x1b   :  { %v71_v13 = vadd.f32 1.0, %v122_v9  ;;  %v74_v14 = vmul.f32 -0.5, %v122_v9  ;;  %v77_v23 = vand.u32 2147483647, %v122_v9 }
  0x1c   :  { %123 = vlog2.f32 %v62_v10  ;;  %v66_v16 = vadd.f32 1.0, %v65_v11  ;;  %vm69_vm0 = vcmp.lt.f32.partialorder %v68_v19, 0.0004427343 }
  0x1d   :  { %125 = vlog2.f32 %v71_v13  ;;  %v75_v20 = vadd.f32 1.0, %v74_v14  ;;  %vm78_vm1 = vcmp.lt.f32.partialorder %v77_v23, 0.0004427343 }
  0x1e   :  { %v67_v24 = vmul.f32 %v120_v8, %v66_v16 }
  0x1f   :  { %v76_v27 = vmul.f32 %v122_v9, %v75_v20 }
  0x22   :  { %v124_v25 = vpop.eup %123 }
  0x23   :  { %v126_v28 = vpop.eup %125  ;;  %v64_v30 = vmul.f32 0.6931472, %v124_v25 }
  0x24   :  { %v73_v31 = vmul.f32 0.6931472, %v126_v28 }
  0x25   :  { %v70_v32 = vsel %vm69_vm0, %v67_v24, %v64_v30 }
  0x26   :  { %v79_v33 = vsel %vm78_vm1, %v76_v27, %v73_v31  ;;  %v80_v34 = vadd.f32 %v70_v32, %v60_v26 }
  0x27   :  { %v81_v35 = vadd.f32 %v79_v33, %v61_v29 }
  0x28   :  { %v82_v36 = vsub.f32 0.0, %v80_v34 }
  0x29   :  { %v83_v37 = vsub.f32 0.0, %v81_v35 }
  0x2a   :  { %v84_v38 = vmul.f32 1.442695, %v82_v36 }
  0x2b   :  { %v86_v39 = vmul.f32 1.442695, %v83_v37 }
  0x2c   :  { %127 = vpow2.f32 %v84_v38 }
  0x2d   :  { %129 = vpow2.f32 %v86_v39 }
  0x32   :  { %v128_v40 = vpop.eup %127 }
  0x33   :  { %v130_v41 = vpop.eup %129  ;;  %v88_v42 = vsub.f32 1.0, %v128_v40 }
  0x34   :  { %v89_v43 = vsub.f32 1.0, %v130_v41 }
  0x35   :  { %v90_v44 = vmul.f32 %v88_v42, %v88_v42 }
  0x36   :  { %v91_v45 = vmul.f32 %v89_v43, %v89_v43 }
  0x37   :  { %v92_v46 = vmul.f32 %v90_v44, %v80_v34 }
  0x38   :  { %v93_v47 = vmul.f32 %v91_v45, %v81_v35 }
  0x3a   :  { %v94_v48 = vadd.f32 %v93_v47, %v92_v46 }
  0x3c   :  { %95 = vst [vmem:[#allocation7] sm:$0xff] %v94_v48 }
  0x3d   :  { %106 = dma.vmem_to_hbm [thread:$0]  %s102_s1, 128, %s104_s23, [#allocation4]  }
  0x3e   :  { %207 = dma.done.wait [#allocation4], 128  }
  0x3f   :  { %208 = vsyncadd [#allocation4], 4294967168 }
  0x40   :  { %111 = vsyncpa [#allocation3], 1 }
  0x41   :  { %112 = vsyncpa [#allocation6], 1 }
  0x42   :  { %113 = vsyncpa [#allocation4], 1 }

</bundles_post_ra>
